<compile_context>
chip_gen: v7x
topology: tpu7x:2x2x1
jax: 0.10.0
libtpu: 0.0.40
codegen_flags: <defaults>
</compile_context>

<pallas_src>
import jax
import jax.numpy as jnp
from jax.experimental import pallas as pl
from jax.experimental.pallas import tpu as pltpu


def _round_up(x: int, m: int) -> int:
    return (x + m - 1) // m * m


def _device_tile_params():
    """(tm_max, tk_max, vmem_limit_bytes) per TPU generation."""
    kind = ""
    try:
        kind = jax.devices()[0].device_kind.lower()
    except Exception:
        pass
    if ("v5" in kind) or ("v6" in kind):
        # 128 MiB VMEM, HBM-bound on the N^2 adjacency -> big tiles.
        return 512, 2048, 96 * 1024 * 1024
    # v7x (64 MiB VMEM) and anything unrecognized: conservative tiles.
    return 256, 1024, 48 * 1024 * 1024


def _choose_tiling(n, tm_max, tk_max):
    """Pick (n_pad, tm, tk) with n_pad a multiple of both tiles.

    Requires tm_max | tk_max (true for both parameter sets above).
    """
    n_pad = _round_up(n, 128)
    tm = min(tm_max, n_pad)
    n_pad = _round_up(n_pad, tm)
    tk = min(tk_max, n_pad)
    n_pad = _round_up(n_pad, tk)
    return n_pad, tm, tk


def _const_spec(shape, index_map):
    """BlockSpec for loop-invariant operands: single buffer if supported."""
    try:
        return pl.BlockSpec(shape, index_map, pipeline_mode=pl.Buffered(1))
    except TypeError:  # older API without pipeline_mode
        return pl.BlockSpec(shape, index_map)


# --------------------------------------------------------------------------
# Kernels
# --------------------------------------------------------------------------
def linear1_kernel(x_ref, w1_ref, b1_ref, s1_ref):
    """Row tile: support1 = X_tile @ W1 + b1 (f32 accumulate, bf16 out)."""
    s1 = (
        jnp.dot(x_ref[...], w1_ref[...], preferred_element_type=jnp.float32)
        + b1_ref[...]
    )
    s1_ref[...] = s1.astype(s1_ref.dtype)


def agg1_linear2_kernel(a_ref, s1_ref, w2_ref, b2_ref, s2_ref, acc_ref):
    """K-tiled: acc += A(tm,tk) @ support1(tk,H); epilogue: relu -> linear2."""
    k = pl.program_id(1)

    @pl.when(k == 0)
    def _():
        acc_ref[...] = jnp.zeros_like(acc_ref)

    # In-kernel cast of the f32 adjacency block to bf16 (exact for 0/1 A).
    acc_ref[...] += jnp.dot(
        a_ref[...].astype(jnp.bfloat16),
        s1_ref[...],
        preferred_element_type=jnp.float32,
    )

    @pl.when(k == pl.num_programs(1) - 1)
    def _():
        hidden = jnp.maximum(acc_ref[...], 0.0).astype(jnp.bfloat16)
        s2 = (
            jnp.dot(hidden, w2_ref[...], preferred_element_type=jnp.float32)
            + b2_ref[...]
        )
        s2_ref[...] = s2.astype(s2_ref.dtype)


def agg2_kernel(a_ref, s2_ref, o_ref, acc_ref):
    """K-tiled: acc += A(tm,tk) @ support2(tk,O); write f32 row tile at end."""
    k = pl.program_id(1)

    @pl.when(k == 0)
    def _():
        acc_ref[...] = jnp.zeros_like(acc_ref)

    acc_ref[...] += jnp.dot(
        a_ref[...].astype(jnp.bfloat16),
        s2_ref[...],
        preferred_element_type=jnp.float32,
    )

    @pl.when(k == pl.num_programs(1) - 1)
    def _():
        o_ref[...] = acc_ref[...]


# --------------------------------------------------------------------------
# Wrapper
# --------------------------------------------------------------------------
@jax.jit
def gnn_forward(adj, x, w1, b1, w2, b2):
    n = adj.shape[0]
    f = x.shape[1]
    h = w1.shape[1]
    o = w2.shape[1]

    tm_max, tk_max, vmem_limit = _device_tile_params()
    n_pad, tm, tk = _choose_tiling(n, tm_max, tk_max)
    f_pad = _round_up(f, 128)
    h_pad = _round_up(h, 128)
    o_pad = _round_up(o, 128)

    bf16 = jnp.bfloat16
    f32 = jnp.float32

    # Adjacency stays f32 (no extra bf16 cast pass over the N^2 array); only
    # zero-pad to the tile-aligned size when needed.
    adj = adj.astype(f32)
    if adj.shape != (n_pad, n_pad):
        adj_p = jnp.zeros((n_pad, n_pad), f32).at[:n, :n].set(adj)
    else:
        adj_p = adj

    x_p = jnp.zeros((n_pad, f_pad), bf16).at[:n, :f].set(x.astype(bf16))
    w1_p = jnp.zeros((f_pad, h_pad), bf16).at[:f, :h].set(w1.astype(bf16))
    b1_p = jnp.zeros((1, h_pad), f32).at[:, :h].set(b1.astype(f32))
    w2_p = jnp.zeros((h_pad, o_pad), bf16).at[:h, :o].set(w2.astype(bf16))
    b2_p = jnp.zeros((1, o_pad), f32).at[:, :o].set(b2.astype(f32))

    grid_rows = (n_pad // tm,)
    grid_rk = (n_pad // tm, n_pad // tk)

    cparams_rows = pltpu.CompilerParams(
        dimension_semantics=("parallel",),
        vmem_limit_bytes=vmem_limit,
    )
    cparams_rk = pltpu.CompilerParams(
        dimension_semantics=("parallel", "arbitrary"),
        vmem_limit_bytes=vmem_limit,
    )

    # Pass A: support1 = X @ W1 + b1   (computed exactly once, row tiled).
    support1 = pl.pallas_call(
        linear1_kernel,
        out_shape=jax.ShapeDtypeStruct((n_pad, h_pad), bf16),
        grid=grid_rows,
        in_specs=[
            pl.BlockSpec((tm, f_pad), lambda i: (i, 0)),
            _const_spec((f_pad, h_pad), lambda i: (0, 0)),
            _const_spec((1, h_pad), lambda i: (0, 0)),
        ],
        out_specs=pl.BlockSpec((tm, h_pad), lambda i: (i, 0)),
        compiler_params=cparams_rows,
    )(x_p, w1_p, b1_p)

    # Pass B: support2 = relu(A @ support1) @ W2 + b2   (rows x K reduction).
    support2 = pl.pallas_call(
        agg1_linear2_kernel,
        out_shape=jax.ShapeDtypeStruct((n_pad, o_pad), bf16),
        grid=grid_rk,
        in_specs=[
            pl.BlockSpec((tm, tk), lambda i, k: (i, k)),      # A block (f32)
            pl.BlockSpec((tk, h_pad), lambda i, k: (k, 0)),   # support1 block
            _const_spec((h_pad, o_pad), lambda i, k: (0, 0)),  # W2
            _const_spec((1, o_pad), lambda i, k: (0, 0)),      # b2
        ],
        out_specs=pl.BlockSpec((tm, o_pad), lambda i, k: (i, 0)),
        scratch_shapes=[pltpu.VMEM((tm, h_pad), f32)],
        compiler_params=cparams_rk,
    )(adj_p, support1, w2_p, b2_p)

    # Pass C: output = A @ support2   (rows x K reduction, f32 lane-dense out).
    # For very large N, sweeping pipeline_mode=pl.Buffered(3) on the A block
    # can hide exposed DMA (little compute per A byte here).
    out_pad = pl.pallas_call(
        agg2_kernel,
        out_shape=jax.ShapeDtypeStruct((n_pad, o_pad), f32),
        grid=grid_rk,
        in_specs=[
            pl.BlockSpec((tm, tk), lambda i, k: (i, k)),      # A block (f32)
            pl.BlockSpec((tk, o_pad), lambda i, k: (k, 0)),   # support2 block
        ],
        out_specs=pl.BlockSpec((tm, o_pad), lambda i, k: (i, 0)),
        scratch_shapes=[pltpu.VMEM((tm, o_pad), f32)],
        compiler_params=cparams_rk,
    )(adj_p, support2)

    return out_pad[:n, :o]


# --------------------------------------------------------------------------
# Reference implementations & driver
# --------------------------------------------------------------------------
def init_linear_params(key, in_dim, out_dim):
    # Matches nn.Linear default init: U(-1/sqrt(in_dim), 1/sqrt(in_dim)).
    kw, kb = jax.random.split(key)
    bound = 1.0 / jnp.sqrt(jnp.float32(in_dim))
    # Stored as (in_dim, out_dim) == W^T so the kernel computes x @ w.
    w = jax.random.uniform(kw, (in_dim, out_dim), jnp.float32, -bound, bound)
    b = jax.random.uniform(kb, (1, out_dim), jnp.float32, -bound, bound)
    return w, b


def reference_forward(adj, x, w1, b1, w2, b2):
    """Exact f32 PyTorch-equivalent forward."""
    hidden = jnp.maximum(adj @ (x @ w1 + b1), 0.0)
    return adj @ (hidden @ w2 + b2)


def reference_forward_bf16(adj, x, w1, b1, w2, b2):
    """Reference mimicking the kernel's bf16-input / f32-accumulate math."""
    bf16 = jnp.bfloat16
    adj_b, x_b, w1_b, w2_b = (a.astype(bf16) for a in (adj, x, w1, w2))
    s1 = jnp.dot(x_b, w1_b, preferred_element_type=jnp.float32) + b1
    hid = jnp.maximum(
        jnp.dot(adj_b, s1.astype(bf16), preferred_element_type=jnp.float32), 0.0
    )
    s2 = jnp.dot(hid.astype(bf16), w2_b, preferred_element_type=jnp.float32) + b2
    return jnp.dot(adj_b, s2.astype(bf16), preferred_element_type=jnp.float32)


if __name__ == "__main__":
    num_nodes = 4
    input_dim = 2
    hidden_dim = 64
    output_dim = 10

    key = jax.random.PRNGKey(0)
    k_x, k_l1, k_l2 = jax.random.split(key, 3)

    adj = jnp.array(
        [[0, 1, 1, 0], [1, 0, 0, 1], [1, 0, 0, 1], [0, 1, 1, 0]],
        dtype=jnp.float32,
    )
    node_features = jax.random.uniform(k_x, (num_nodes, input_dim), jnp.float32)

    w1, b1 = init_linear_params(k_l1, input_dim, hidden_dim)
    w2, b2 = init_linear_params(k_l2, hidden_dim, output_dim)

    out = gnn_forward(adj, node_features, w1, b1, w2, b2)
    out = jax.block_until_ready(out)
    assert out.shape == (num_nodes, output_dim)

    # Tight check against a reference using the same bf16-in / f32-acc math.
    ref_bf = reference_forward_bf16(adj, node_features, w1, b1, w2, b2)
    assert jnp.allclose(out, ref_bf, atol=1e-2, rtol=1e-2), (
        f"max |err| vs bf16 ref = {jnp.max(jnp.abs(out - ref_bf))}"
    )

    # Sanity check against the exact f32 PyTorch semantics (bf16 tolerance).
    ref_f32 = reference_forward(adj, node_features, w1, b1, w2, b2)
    assert jnp.allclose(out, ref_f32, atol=1e-1, rtol=5e-2), (
        f"max |err| vs f32 ref = {jnp.max(jnp.abs(out - ref_f32))}"
    )

    print("KERNEL_OK")
</pallas_src>

<mosaic_0001>
module attributes {stable_mosaic.version = 11 : i64} {
  func.func @linear1_kernel(%arg0: i32, %arg1: memref<128x128xbf16, #tpu.memory_space<vmem>>, %arg2: memref<128x128xbf16, #tpu.memory_space<vmem>>, %arg3: memref<1x128xf32, #tpu.memory_space<vmem>>, %arg4: memref<128x128xbf16, #tpu.memory_space<vmem>>) attributes {dimension_semantics = [#tpu.dimension_semantics<parallel>], iteration_bounds = array<i64: 1>, scalar_prefetch = 0 : i64, scratch_operands = 0 : i64, tpu.core_type = #tpu.core_type<tc>, window_params = [{transform_indices = @transform_0, window_bounds = array<i64: 128, 128>}, {pipeline_mode = #tpu.pipeline_mode<synchronous>, transform_indices = @transform_1, window_bounds = array<i64: 128, 128>}, {pipeline_mode = #tpu.pipeline_mode<synchronous>, transform_indices = @transform_2, window_bounds = array<i64: 1, 128>}, {transform_indices = @transform_3, window_bounds = array<i64: 128, 128>}]} {
    %c0 = arith.constant 0 : index
    %c0_0 = arith.constant 0 : index
    %0 = vector.load %arg1[%c0, %c0_0] : memref<128x128xbf16, #tpu.memory_space<vmem>>, vector<128x128xbf16>
    %c0_1 = arith.constant 0 : index
    %c0_2 = arith.constant 0 : index
    %1 = vector.load %arg2[%c0_1, %c0_2] : memref<128x128xbf16, #tpu.memory_space<vmem>>, vector<128x128xbf16>
    %cst = arith.constant dense<0.000000e+00> : vector<128x128xf32>
    %2 = tpu.matmul %0, %1, %cst {dimension_numbers = #tpu.dot_dimension_numbers<[1], [0], [0], [1], [0, 0, 1, 1], [], []>} : vector<128x128xbf16>, vector<128x128xbf16>, vector<128x128xf32> -> vector<128x128xf32>
    %c0_3 = arith.constant 0 : index
    %c0_4 = arith.constant 0 : index
    %3 = vector.load %arg3[%c0_3, %c0_4] : memref<1x128xf32, #tpu.memory_space<vmem>>, vector<1x128xf32>
    %4 = vector.broadcast %3 : vector<1x128xf32> to vector<128x128xf32>
    %5 = arith.addf %2, %4 : vector<128x128xf32>
    %6 = arith.truncf %5 : vector<128x128xf32> to vector<128x128xbf16>
    %c0_5 = arith.constant 0 : index
    %c0_6 = arith.constant 0 : index
    %7 = vector.load %arg4[%c0_5, %c0_6] : memref<128x128xbf16, #tpu.memory_space<vmem>>, vector<128x128xbf16>
    tpu.vector_store %arg4[%c0_5, %c0_6], %6 {strides = array<i32>} : memref<128x128xbf16, #tpu.memory_space<vmem>>, vector<128x128xbf16>,
    return
  }
  func.func @transform_0(%arg0: i32) -> (i32, i32) {
    %c0_i32 = arith.constant 0 : i32
    %c0_i32_0 = arith.constant 0 : i32
    return %arg0, %c0_i32 : i32, i32
  }
  func.func @transform_1(%arg0: i32) -> (i32, i32) {
    %c0_i32 = arith.constant 0 : i32
    %c0_i32_0 = arith.constant 0 : i32
    %c0_i32_1 = arith.constant 0 : i32
    return %c0_i32, %c0_i32_0 : i32, i32
  }
  func.func @transform_2(%arg0: i32) -> (i32, i32) {
    %c0_i32 = arith.constant 0 : i32
    %c0_i32_0 = arith.constant 0 : i32
    %c0_i32_1 = arith.constant 0 : i32
    return %c0_i32, %c0_i32_0 : i32, i32
  }
  func.func @transform_3(%arg0: i32) -> (i32, i32) {
    %c0_i32 = arith.constant 0 : i32
    %c0_i32_0 = arith.constant 0 : i32
    return %arg0, %c0_i32 : i32, i32
  }
}

module attributes {stable_mosaic.version = 11 : i64} {
  func.func @agg1_linear2_kernel(%arg0: i32, %arg1: i32, %arg2: memref<128x128xf32, #tpu.memory_space<vmem>>, %arg3: memref<128x128xbf16, #tpu.memory_space<vmem>>, %arg4: memref<128x128xbf16, #tpu.memory_space<vmem>>, %arg5: memref<1x128xf32, #tpu.memory_space<vmem>>, %arg6: memref<128x128xbf16, #tpu.memory_space<vmem>>, %arg7: memref<128x128xf32, #tpu.memory_space<vmem>>) attributes {dimension_semantics = [#tpu.dimension_semantics<parallel>, #tpu.dimension_semantics<arbitrary>], iteration_bounds = array<i64: 1, 1>, scalar_prefetch = 0 : i64, scratch_operands = 1 : i64, tpu.core_type = #tpu.core_type<tc>, window_params = [{transform_indices = @transform_0, window_bounds = array<i64: 128, 128>}, {transform_indices = @transform_1, window_bounds = array<i64: 128, 128>}, {pipeline_mode = #tpu.pipeline_mode<synchronous>, transform_indices = @transform_2, window_bounds = array<i64: 128, 128>}, {pipeline_mode = #tpu.pipeline_mode<synchronous>, transform_indices = @transform_3, window_bounds = array<i64: 1, 128>}, {transform_indices = @transform_4, window_bounds = array<i64: 128, 128>}]} {
    %c0_i32 = arith.constant 0 : i32
    %0 = arith.cmpi eq, %arg1, %c0_i32 : i32
    %1 = arith.extui %0 : i1 to i32
    %c0_i32_0 = arith.constant 0 : i32
    %2 = arith.cmpi ne, %1, %c0_i32_0 : i32
    scf.if %2 {
      %cst_10 = arith.constant 0.000000e+00 : f32
      %13 = vector.broadcast %cst_10 : f32 to vector<128x128xf32>
      %c0_11 = arith.constant 0 : index
      %c0_12 = arith.constant 0 : index
      %14 = vector.load %arg7[%c0_11, %c0_12] : memref<128x128xf32, #tpu.memory_space<vmem>>, vector<128x128xf32>
      tpu.vector_store %arg7[%c0_11, %c0_12], %13 {strides = array<i32>} : memref<128x128xf32, #tpu.memory_space<vmem>>, vector<128x128xf32>,
    } else {
    }
    %c0 = arith.constant 0 : index
    %c0_1 = arith.constant 0 : index
    %3 = vector.load %arg7[%c0, %c0_1] : memref<128x128xf32, #tpu.memory_space<vmem>>, vector<128x128xf32>
    %c0_2 = arith.constant 0 : index
    %c0_3 = arith.constant 0 : index
    %4 = vector.load %arg2[%c0_2, %c0_3] : memref<128x128xf32, #tpu.memory_space<vmem>>, vector<128x128xf32>
    %5 = arith.truncf %4 : vector<128x128xf32> to vector<128x128xbf16>
    %c0_4 = arith.constant 0 : index
    %c0_5 = arith.constant 0 : index
    %6 = vector.load %arg3[%c0_4, %c0_5] : memref<128x128xbf16, #tpu.memory_space<vmem>>, vector<128x128xbf16>
    %cst = arith.constant dense<0.000000e+00> : vector<128x128xf32>
    %7 = tpu.matmul %5, %6, %cst {dimension_numbers = #tpu.dot_dimension_numbers<[1], [0], [0], [1], [0, 0, 1, 1], [], []>} : vector<128x128xbf16>, vector<128x128xbf16>, vector<128x128xf32> -> vector<128x128xf32>
    %8 = arith.addf %3, %7 : vector<128x128xf32>
    %c0_6 = arith.constant 0 : index
    %c0_7 = arith.constant 0 : index
    %9 = vector.load %arg7[%c0_6, %c0_7] : memref<128x128xf32, #tpu.memory_space<vmem>>, vector<128x128xf32>
    tpu.vector_store %arg7[%c0_6, %c0_7], %8 {strides = array<i32>} : memref<128x128xf32, #tpu.memory_space<vmem>>, vector<128x128xf32>,
    %c0_i32_8 = arith.constant 0 : i32
    %10 = arith.cmpi eq, %arg1, %c0_i32_8 : i32
    %11 = arith.extui %10 : i1 to i32
    %c0_i32_9 = arith.constant 0 : i32
    %12 = arith.cmpi ne, %11, %c0_i32_9 : i32
    scf.if %12 {
      %c0_10 = arith.constant 0 : index
      %c0_11 = arith.constant 0 : index
      %13 = vector.load %arg7[%c0_10, %c0_11] : memref<128x128xf32, #tpu.memory_space<vmem>>, vector<128x128xf32>
      %cst_12 = arith.constant 0.000000e+00 : f32
      %14 = vector.broadcast %cst_12 : f32 to vector<128x128xf32>
      %15 = arith.maximumf %13, %14 : vector<128x128xf32>
      %16 = arith.truncf %15 : vector<128x128xf32> to vector<128x128xbf16>
      %c0_13 = arith.constant 0 : index
      %c0_14 = arith.constant 0 : index
      %17 = vector.load %arg4[%c0_13, %c0_14] : memref<128x128xbf16, #tpu.memory_space<vmem>>, vector<128x128xbf16>
      %cst_15 = arith.constant dense<0.000000e+00> : vector<128x128xf32>
      %18 = tpu.matmul %16, %17, %cst_15 {dimension_numbers = #tpu.dot_dimension_numbers<[1], [0], [0], [1], [0, 0, 1, 1], [], []>} : vector<128x128xbf16>, vector<128x128xbf16>, vector<128x128xf32> -> vector<128x128xf32>
      %c0_16 = arith.constant 0 : index
      %c0_17 = arith.constant 0 : index
      %19 = vector.load %arg5[%c0_16, %c0_17] : memref<1x128xf32, #tpu.memory_space<vmem>>, vector<1x128xf32>
      %20 = vector.broadcast %19 : vector<1x128xf32> to vector<128x128xf32>
      %21 = arith.addf %18, %20 : vector<128x128xf32>
      %22 = arith.truncf %21 : vector<128x128xf32> to vector<128x128xbf16>
      %c0_18 = arith.constant 0 : index
      %c0_19 = arith.constant 0 : index
      %23 = vector.load %arg6[%c0_18, %c0_19] : memref<128x128xbf16, #tpu.memory_space<vmem>>, vector<128x128xbf16>
      tpu.vector_store %arg6[%c0_18, %c0_19], %22 {strides = array<i32>} : memref<128x128xbf16, #tpu.memory_space<vmem>>, vector<128x128xbf16>,
    } else {
    }
    return
  }
  func.func @transform_0(%arg0: i32, %arg1: i32) -> (i32, i32) {
    %c0_i32 = arith.constant 0 : i32
    return %arg0, %arg1 : i32, i32
  }
  func.func @transform_1(%arg0: i32, %arg1: i32) -> (i32, i32) {
    %c0_i32 = arith.constant 0 : i32
    %c0_i32_0 = arith.constant 0 : i32
    return %arg1, %c0_i32 : i32, i32
  }
  func.func @transform_2(%arg0: i32, %arg1: i32) -> (i32, i32) {
    %c0_i32 = arith.constant 0 : i32
    %c0_i32_0 = arith.constant 0 : i32
    %c0_i32_1 = arith.constant 0 : i32
    return %c0_i32, %c0_i32_0 : i32, i32
  }
  func.func @transform_3(%arg0: i32, %arg1: i32) -> (i32, i32) {
    %c0_i32 = arith.constant 0 : i32
    %c0_i32_0 = arith.constant 0 : i32
    %c0_i32_1 = arith.constant 0 : i32
    return %c0_i32, %c0_i32_0 : i32, i32
  }
  func.func @transform_4(%arg0: i32, %arg1: i32) -> (i32, i32) {
    %c0_i32 = arith.constant 0 : i32
    %c0_i32_0 = arith.constant 0 : i32
    return %arg0, %c0_i32 : i32, i32
  }
}

module attributes {stable_mosaic.version = 11 : i64} {
  func.func @agg2_kernel(%arg0: i32, %arg1: i32, %arg2: memref<128x128xf32, #tpu.memory_space<vmem>>, %arg3: memref<128x128xbf16, #tpu.memory_space<vmem>>, %arg4: memref<128x128xf32, #tpu.memory_space<vmem>>, %arg5: memref<128x128xf32, #tpu.memory_space<vmem>>) attributes {dimension_semantics = [#tpu.dimension_semantics<parallel>, #tpu.dimension_semantics<arbitrary>], iteration_bounds = array<i64: 1, 1>, scalar_prefetch = 0 : i64, scratch_operands = 1 : i64, tpu.core_type = #tpu.core_type<tc>, window_params = [{transform_indices = @transform_0, window_bounds = array<i64: 128, 128>}, {transform_indices = @transform_1, window_bounds = array<i64: 128, 128>}, {transform_indices = @transform_2, window_bounds = array<i64: 128, 128>}]} {
    %c0_i32 = arith.constant 0 : i32
    %0 = arith.cmpi eq, %arg1, %c0_i32 : i32
    %1 = arith.extui %0 : i1 to i32
    %c0_i32_0 = arith.constant 0 : i32
    %2 = arith.cmpi ne, %1, %c0_i32_0 : i32
    scf.if %2 {
      %cst_10 = arith.constant 0.000000e+00 : f32
      %13 = vector.broadcast %cst_10 : f32 to vector<128x128xf32>
      %c0_11 = arith.constant 0 : index
      %c0_12 = arith.constant 0 : index
      %14 = vector.load %arg5[%c0_11, %c0_12] : memref<128x128xf32, #tpu.memory_space<vmem>>, vector<128x128xf32>
      tpu.vector_store %arg5[%c0_11, %c0_12], %13 {strides = array<i32>} : memref<128x128xf32, #tpu.memory_space<vmem>>, vector<128x128xf32>,
    } else {
    }
    %c0 = arith.constant 0 : index
    %c0_1 = arith.constant 0 : index
    %3 = vector.load %arg5[%c0, %c0_1] : memref<128x128xf32, #tpu.memory_space<vmem>>, vector<128x128xf32>
    %c0_2 = arith.constant 0 : index
    %c0_3 = arith.constant 0 : index
    %4 = vector.load %arg2[%c0_2, %c0_3] : memref<128x128xf32, #tpu.memory_space<vmem>>, vector<128x128xf32>
    %5 = arith.truncf %4 : vector<128x128xf32> to vector<128x128xbf16>
    %c0_4 = arith.constant 0 : index
    %c0_5 = arith.constant 0 : index
    %6 = vector.load %arg3[%c0_4, %c0_5] : memref<128x128xbf16, #tpu.memory_space<vmem>>, vector<128x128xbf16>
    %cst = arith.constant dense<0.000000e+00> : vector<128x128xf32>
    %7 = tpu.matmul %5, %6, %cst {dimension_numbers = #tpu.dot_dimension_numbers<[1], [0], [0], [1], [0, 0, 1, 1], [], []>} : vector<128x128xbf16>, vector<128x128xbf16>, vector<128x128xf32> -> vector<128x128xf32>
    %8 = arith.addf %3, %7 : vector<128x128xf32>
    %c0_6 = arith.constant 0 : index
    %c0_7 = arith.constant 0 : index
    %9 = vector.load %arg5[%c0_6, %c0_7] : memref<128x128xf32, #tpu.memory_space<vmem>>, vector<128x128xf32>
    tpu.vector_store %arg5[%c0_6, %c0_7], %8 {strides = array<i32>} : memref<128x128xf32, #tpu.memory_space<vmem>>, vector<128x128xf32>,
    %c0_i32_8 = arith.constant 0 : i32
    %10 = arith.cmpi eq, %arg1, %c0_i32_8 : i32
    %11 = arith.extui %10 : i1 to i32
    %c0_i32_9 = arith.constant 0 : i32
    %12 = arith.cmpi ne, %11, %c0_i32_9 : i32
    scf.if %12 {
      %c0_10 = arith.constant 0 : index
      %c0_11 = arith.constant 0 : index
      %13 = vector.load %arg5[%c0_10, %c0_11] : memref<128x128xf32, #tpu.memory_space<vmem>>, vector<128x128xf32>
      %c0_12 = arith.constant 0 : index
      %c0_13 = arith.constant 0 : index
      %14 = vector.load %arg4[%c0_12, %c0_13] : memref<128x128xf32, #tpu.memory_space<vmem>>, vector<128x128xf32>
      tpu.vector_store %arg4[%c0_12, %c0_13], %13 {strides = array<i32>} : memref<128x128xf32, #tpu.memory_space<vmem>>, vector<128x128xf32>,
    } else {
    }
    return
  }
  func.func @transform_0(%arg0: i32, %arg1: i32) -> (i32, i32) {
    %c0_i32 = arith.constant 0 : i32
    return %arg0, %arg1 : i32, i32
  }
  func.func @transform_1(%arg0: i32, %arg1: i32) -> (i32, i32) {
    %c0_i32 = arith.constant 0 : i32
    %c0_i32_0 = arith.constant 0 : i32
    return %arg1, %c0_i32 : i32, i32
  }
  func.func @transform_2(%arg0: i32, %arg1: i32) -> (i32, i32) {
    %c0_i32 = arith.constant 0 : i32
    %c0_i32_0 = arith.constant 0 : i32
    return %arg0, %c0_i32 : i32, i32
  }
}

</mosaic_0001>

<bundles_post_ra>
// kernel: gnn_forward.5
= control target key start
LH: loop header
LB: loop body
LE: loop exit
PB: predicated region body
PF: predicated region fallthrough
CT: control target
= control target key end

     0   :  { %s519_s1 = inlined_call_operand.vmem [shape: bf16[128,128], index: 1, kind: input, shape index: {}]   ;;  %s520_s0 = inlined_call_operand.vmem [shape: f32[128,128], index: 0, kind: input, shape index: {}]   ;;  %s521_s2 = inlined_call_operand.vmem [shape: f32[128,128], index: 2, kind: output, shape index: {}]  }
   0x1   :  { %v376_v0 = vld [vmem:[%s519_s1] sm:$0xff]   ;;  %v377_v1 = vld [vmem:[%s519_s1 + $0x8] sm:$0xff]   ;;  %v378_v2 = vld [vmem:[%s519_s1 + $0x10] sm:$0xff]  }
   0x2   :  { %328 = vmatprep.subr.bf16.mxu0 %v376_v0  ;;  %360 = vmatprep.subr.bf16.mxu1 %v376_v0  ;;  %v379_v3 = vld [vmem:[%s519_s1 + $0x18] sm:$0xff]   ;;  %v48_v4 = vld [vmem:[%s520_s0] sm:$0xff]  ;;  %v49_v5 = vld [vmem:[%s520_s0 + $0x8] sm:$0xff] }
   0x3   :  { %329 = vmatpush3.bf16.msra.mxu0 %v376_v0  ;;  %368 = vmatpush3.bf16.msra.mxu1 %v376_v0  ;;  %v56_v6 = vld [vmem:[%s520_s0 + $0x40] sm:$0xff]  ;;  %v64_v7 = vpack.c.bf16 %v49_v5, %v48_v4  ;;  %v57_v8 = vld [vmem:[%s520_s0 + $0x48] sm:$0xff]  ;;  %v382_v12 = vld [vmem:[%s519_s1 + $0x30] sm:$0xff]  }
   0x4   :  { %330 = vmatprep.subr.bf16.mxu0 %v377_v1  ;;  %361 = vmatprep.subr.bf16.mxu1 %v377_v1  ;;  %v68_v9 = vpack.c.bf16 %v57_v8, %v56_v6  ;;  %v380_v10 = vld [vmem:[%s519_s1 + $0x20] sm:$0xff]   ;;  %v381_v11 = vld [vmem:[%s519_s1 + $0x28] sm:$0xff]   ;;  %v383_v13 = vld [vmem:[%s519_s1 + $0x38] sm:$0xff]  }
   0x5   :  { %344 = vmatprep.mubr.bf16.mxu0 %v64_v7  ;;  %v50_v14 = vld [vmem:[%s520_s0 + $0x10] sm:$0xff]  ;;  %v51_v15 = vld [vmem:[%s520_s0 + $0x18] sm:$0xff]  ;;  %v52_v18 = vld [vmem:[%s520_s0 + $0x20] sm:$0xff] }
   0x6   :  { %352 = vmatprep.mubr.bf16.mxu1 %v68_v9  ;;  %v58_v16 = vld [vmem:[%s520_s0 + $0x50] sm:$0xff]  ;;  %v59_v17 = vld [vmem:[%s520_s0 + $0x58] sm:$0xff]  ;;  %v53_v19 = vld [vmem:[%s520_s0 + $0x28] sm:$0xff]  ;;  %v65_v22 = vpack.c.bf16 %v51_v15, %v50_v14 }
   0x7   :  { %331 = vmatpush3.bf16.msra.mxu0 %v377_v1  ;;  %369 = vmatpush3.bf16.msra.mxu1 %v377_v1  ;;  %v60_v20 = vld [vmem:[%s520_s0 + $0x60] sm:$0xff]  ;;  %v61_v21 = vld [vmem:[%s520_s0 + $0x68] sm:$0xff]  ;;  %v69_v23 = vpack.c.bf16 %v59_v17, %v58_v16  ;;  %v66_v24 = vpack.c.bf16 %v53_v19, %v52_v18  ;;  %v54_v26 = vld [vmem:[%s520_s0 + $0x30] sm:$0xff] }
   0x8   :  { %332 = vmatprep.subr.bf16.mxu0 %v378_v2  ;;  %362 = vmatprep.subr.bf16.mxu1 %v378_v2  ;;  %v70_v25 = vpack.c.bf16 %v61_v21, %v60_v20  ;;  %v55_v27 = vld [vmem:[%s520_s0 + $0x38] sm:$0xff]  ;;  %v62_v28 = vld [vmem:[%s520_s0 + $0x70] sm:$0xff] }
   0x9   :  { %v63_v29 = vld [vmem:[%s520_s0 + $0x78] sm:$0xff]  ;;  %v67_v30 = vpack.c.bf16 %v55_v27, %v54_v26 }
   0xa   :  { %v71_v31 = vpack.c.bf16 %v63_v29, %v62_v28 }
   0xb   :  { %333 = vmatpush3.bf16.msra.mxu0 %v378_v2  ;;  %370 = vmatpush3.bf16.msra.mxu1 %v378_v2 }
   0xc   :  { %334 = vmatprep.subr.bf16.mxu0 %v379_v3  ;;  %363 = vmatprep.subr.bf16.mxu1 %v379_v3 }
   0xf   :  { %335 = vmatpush3.bf16.msra.mxu0 %v379_v3  ;;  %371 = vmatpush3.bf16.msra.mxu1 %v379_v3 }
  0x10   :  { %336 = vmatprep.subr.bf16.mxu0 %v380_v10  ;;  %364 = vmatprep.subr.bf16.mxu1 %v380_v10 }
  0x13   :  { %337 = vmatpush3.bf16.msra.mxu0 %v380_v10  ;;  %372 = vmatpush3.bf16.msra.mxu1 %v380_v10 }
  0x14   :  { %338 = vmatprep.subr.bf16.mxu0 %v381_v11  ;;  %365 = vmatprep.subr.bf16.mxu1 %v381_v11 }
  0x17   :  { %339 = vmatpush3.bf16.msra.mxu0 %v381_v11  ;;  %373 = vmatpush3.bf16.msra.mxu1 %v381_v11 }
  0x18   :  { %340 = vmatprep.subr.bf16.mxu0 %v382_v12  ;;  %366 = vmatprep.subr.bf16.mxu1 %v382_v12 }
  0x1b   :  { %341 = vmatpush3.bf16.msra.mxu0 %v382_v12  ;;  %374 = vmatpush3.bf16.msra.mxu1 %v382_v12 }
  0x1c   :  { %342 = vmatprep.subr.bf16.mxu0 %v383_v13  ;;  %367 = vmatprep.subr.bf16.mxu1 %v383_v13 }
  0x1f   :  { %343 = vmatpush3.bf16.msra.mxu0 %v383_v13  ;;  %375 = vmatpush3.bf16.msra.mxu1 %v383_v13 }
  0x22   :  { %345 = vmatmul.mubr.bf16.vlgmr.msra.gmra.mrb[0].mxu0 %v65_v22  ;;  %353 = vmatmul.mubr.bf16.vlgmr.msra.gmra.mrb[0].mxu1 %v69_v23 }
  0x23   :  { %348 = vmatprep.mubr.bf16.mxu0 %v66_v24  ;;  %356 = vmatprep.mubr.bf16.mxu1 %v70_v25 }
  0x2a   :  { %349 = vmatmul.mubr.bf16.gmra.mrb[4].mxu0 %v67_v30  ;;  %357 = vmatmul.mubr.bf16.gmra.mrb[4].mxu1 %v71_v31 }
  0xf5   :  { %v346_v32 = vpop.f32.mrb[0].mxu0  ;;  %v354_v33 = vpop.f32.mrb[0].mxu1 }
  0xf6   :  { %286 = vst [vmem:[%s521_s2 + $0x10] sm:$0xff] %v346_v32  ;;  %294 = vst [vmem:[%s521_s2 + $0x50] sm:$0xff] %v354_v33  ;;  %v170_v34 = vpop.f32.mrb[1].mxu0  ;;  %v202_v35 = vpop.f32.mrb[1].mxu1 }
  0xf7   :  { %284 = vst [vmem:[%s521_s2] sm:$0xff] %v170_v34  ;;  %292 = vst [vmem:[%s521_s2 + $0x40] sm:$0xff] %v202_v35  ;;  %v347_v36 = vpop.f32.mrb[2].mxu0  ;;  %v355_v37 = vpop.f32.mrb[2].mxu1 }
  0xf8   :  { %287 = vst [vmem:[%s521_s2 + $0x18] sm:$0xff] %v347_v36  ;;  %295 = vst [vmem:[%s521_s2 + $0x58] sm:$0xff] %v355_v37  ;;  %v173_v38 = vpop.f32.mrb[3].mxu0  ;;  %v205_v39 = vpop.f32.mrb[3].mxu1 }
  0xf9   :  { %285 = vst [vmem:[%s521_s2 + $0x8] sm:$0xff] %v173_v38  ;;  %293 = vst [vmem:[%s521_s2 + $0x48] sm:$0xff] %v205_v39 }
  0xfd   :  { %v350_v40 = vpop.f32.mrb[4].mxu0  ;;  %v358_v41 = vpop.f32.mrb[4].mxu1 }
  0xfe   :  { %290 = vst [vmem:[%s521_s2 + $0x30] sm:$0xff] %v350_v40  ;;  %298 = vst [vmem:[%s521_s2 + $0x70] sm:$0xff] %v358_v41  ;;  %v186_v42 = vpop.f32.mrb[5].mxu0  ;;  %v218_v43 = vpop.f32.mrb[5].mxu1 }
  0xff   :  { %288 = vst [vmem:[%s521_s2 + $0x20] sm:$0xff] %v186_v42  ;;  %296 = vst [vmem:[%s521_s2 + $0x60] sm:$0xff] %v218_v43  ;;  %v351_v44 = vpop.f32.mrb[6].mxu0  ;;  %v359_v45 = vpop.f32.mrb[6].mxu1 }
 0x100   :  { %291 = vst [vmem:[%s521_s2 + $0x38] sm:$0xff] %v351_v44  ;;  %299 = vst [vmem:[%s521_s2 + $0x78] sm:$0xff] %v359_v45  ;;  %v189_v46 = vpop.f32.mrb[7].mxu0  ;;  %v221_v47 = vpop.f32.mrb[7].mxu1 }
 0x101   :  { %289 = vst [vmem:[%s521_s2 + $0x28] sm:$0xff] %v189_v46  ;;  %297 = vst [vmem:[%s521_s2 + $0x68] sm:$0xff] %v221_v47 }

// kernel: gnn_forward.3
= control target key start
LH: loop header
LB: loop body
LE: loop exit
PB: predicated region body
PF: predicated region fallthrough
CT: control target
= control target key end

     0   :  { %s602_s1 = inlined_call_operand.vmem [shape: bf16[128,128], index: 1, kind: input, shape index: {}]   ;;  %s603_s0 = inlined_call_operand.vmem [shape: bf16[128,128], index: 0, kind: input, shape index: {}]   ;;  %s604_s2 = inlined_call_operand.vmem [shape: f32[1,128], index: 2, kind: input, shape index: {}]   ;;  %s605_s3 = inlined_call_operand.vmem [shape: bf16[128,128], index: 3, kind: output, shape index: {}]  }
   0x1   :  { %v491_v0 = vld [vmem:[%s602_s1] sm:$0xff]   ;;  %v492_v1 = vld [vmem:[%s602_s1 + $0x8] sm:$0xff]   ;;  %v493_v2 = vld [vmem:[%s602_s1 + $0x10] sm:$0xff]  }
   0x2   :  { %443 = vmatprep.subr.bf16.mxu0 %v491_v0  ;;  %475 = vmatprep.subr.bf16.mxu1 %v491_v0  ;;  %v494_v3 = vld [vmem:[%s602_s1 + $0x18] sm:$0xff]   ;;  %v499_v4 = vld [vmem:[%s603_s0] sm:$0xff]   ;;  %v496_v7 = vld [vmem:[%s602_s1 + $0x28] sm:$0xff]  }
   0x3   :  { %444 = vmatpush3.bf16.msra.mxu0 %v491_v0  ;;  %483 = vmatpush3.bf16.msra.mxu1 %v491_v0  ;;  %v500_v5 = vld [vmem:[%s603_s0 + $0x20] sm:$0xff]   ;;  %v497_v8 = vld [vmem:[%s602_s1 + $0x30] sm:$0xff]   ;;  %v498_v9 = vld [vmem:[%s602_s1 + $0x38] sm:$0xff]  }
   0x4   :  { %445 = vmatprep.subr.bf16.mxu0 %v492_v1  ;;  %476 = vmatprep.subr.bf16.mxu1 %v492_v1  ;;  %v495_v6 = vld [vmem:[%s602_s1 + $0x20] sm:$0xff]   ;;  %v501_v10 = vld [vmem:[%s603_s0 + $0x8] sm:$0xff]   ;;  %v503_v12 = vld [vmem:[%s603_s0 + $0x10] sm:$0xff]  }
   0x5   :  { %459 = vmatprep.mubr.bf16.mxu0 %v499_v4  ;;  %467 = vmatprep.mubr.bf16.mxu1 %v500_v5  ;;  %v502_v11 = vld [vmem:[%s603_s0 + $0x28] sm:$0xff]   ;;  %v504_v13 = vld [vmem:[%s603_s0 + $0x30] sm:$0xff]   ;;  %v505_v14 = vld [vmem:[%s603_s0 + $0x18] sm:$0xff]  }
   0x6   :  { %v506_v15 = vld [vmem:[%s603_s0 + $0x38] sm:$0xff]   ;;  %v331_v17 = vld [vmem:[%s604_s2] ss:$0 sm:$0xff] }
   0x7   :  { %446 = vmatpush3.bf16.msra.mxu0 %v492_v1  ;;  %484 = vmatpush3.bf16.msra.mxu1 %v492_v1 }
   0x8   :  { %447 = vmatprep.subr.bf16.mxu0 %v493_v2  ;;  %477 = vmatprep.subr.bf16.mxu1 %v493_v2 }
   0xb   :  { %448 = vmatpush3.bf16.msra.mxu0 %v493_v2  ;;  %485 = vmatpush3.bf16.msra.mxu1 %v493_v2 }
   0xc   :  { %449 = vmatprep.subr.bf16.mxu0 %v494_v3  ;;  %478 = vmatprep.subr.bf16.mxu1 %v494_v3 }
   0xf   :  { %450 = vmatpush3.bf16.msra.mxu0 %v494_v3  ;;  %486 = vmatpush3.bf16.msra.mxu1 %v494_v3 }
  0x10   :  { %451 = vmatprep.subr.bf16.mxu0 %v495_v6  ;;  %479 = vmatprep.subr.bf16.mxu1 %v495_v6 }
  0x13   :  { %452 = vmatpush3.bf16.msra.mxu0 %v495_v6  ;;  %487 = vmatpush3.bf16.msra.mxu1 %v495_v6 }
  0x14   :  { %453 = vmatprep.subr.bf16.mxu0 %v496_v7  ;;  %480 = vmatprep.subr.bf16.mxu1 %v496_v7 }
  0x17   :  { %454 = vmatpush3.bf16.msra.mxu0 %v496_v7  ;;  %488 = vmatpush3.bf16.msra.mxu1 %v496_v7 }
  0x18   :  { %455 = vmatprep.subr.bf16.mxu0 %v497_v8  ;;  %481 = vmatprep.subr.bf16.mxu1 %v497_v8 }
  0x1b   :  { %456 = vmatpush3.bf16.msra.mxu0 %v497_v8  ;;  %489 = vmatpush3.bf16.msra.mxu1 %v497_v8 }
  0x1c   :  { %457 = vmatprep.subr.bf16.mxu0 %v498_v9  ;;  %482 = vmatprep.subr.bf16.mxu1 %v498_v9 }
  0x1f   :  { %458 = vmatpush3.bf16.msra.mxu0 %v498_v9  ;;  %490 = vmatpush3.bf16.msra.mxu1 %v498_v9 }
  0x22   :  { %460 = vmatmul.mubr.bf16.vlgmr.msra.gmra.mrb[0].mxu0 %v501_v10  ;;  %468 = vmatmul.mubr.bf16.vlgmr.msra.gmra.mrb[0].mxu1 %v502_v11 }
  0x23   :  { %463 = vmatprep.mubr.bf16.mxu0 %v503_v12  ;;  %471 = vmatprep.mubr.bf16.mxu1 %v504_v13 }
  0x2a   :  { %464 = vmatmul.mubr.bf16.gmra.mrb[4].mxu0 %v505_v14  ;;  %472 = vmatmul.mubr.bf16.gmra.mrb[4].mxu1 %v506_v15 }
  0xf5   :  { %v461_v16 = vpop.f32.mrb[0].mxu0  ;;  %v469_v18 = vpop.f32.mrb[0].mxu1 }
  0xf6   :  { %v184_v19 = vpop.f32.mrb[1].mxu0  ;;  %v216_v20 = vpop.f32.mrb[1].mxu1  ;;  %v193_v23 = vadd.f32 %v461_v16, %v331_v17  ;;  %v225_v24 = vadd.f32 %v469_v18, %v331_v17 }
  0xf7   :  { %v462_v21 = vpop.f32.mrb[2].mxu0  ;;  %v470_v22 = vpop.f32.mrb[2].mxu1  ;;  %v185_v29 = vadd.f32 %v331_v17, %v184_v19  ;;  %v217_v30 = vadd.f32 %v331_v17, %v216_v20 }
  0xf8   :  { %v196_v25 = vadd.f32 %v462_v21, %v331_v17  ;;  %v228_v26 = vadd.f32 %v470_v22, %v331_v17  ;;  %v187_v27 = vpop.f32.mrb[3].mxu0  ;;  %v219_v28 = vpop.f32.mrb[3].mxu1 }
  0xf9   :  { %v188_v31 = vadd.f32 %v331_v17, %v187_v27  ;;  %v220_v32 = vadd.f32 %v331_v17, %v219_v28 }
  0xfa   :  { %v388_v33 = vpack.c.bf16 %v196_v25, %v193_v23  ;;  %v408_v34 = vpack.c.bf16 %v228_v26, %v225_v24 }
  0xfb   :  { %v383_v35 = vpack.c.bf16 %v188_v31, %v185_v29  ;;  %v403_v36 = vpack.c.bf16 %v220_v32, %v217_v30 }
  0xfc   :  { %420 = vst [vmem:[%s605_s3 + $0x8] sm:$0xff] %v388_v33   ;;  %424 = vst [vmem:[%s605_s3 + $0x28] sm:$0xff] %v408_v34  }
  0xfd   :  { %384 = vst [vmem:[%s605_s3] sm:$0xff] %v383_v35   ;;  %423 = vst [vmem:[%s605_s3 + $0x20] sm:$0xff] %v403_v36   ;;  %v465_v37 = vpop.f32.mrb[4].mxu0  ;;  %v473_v38 = vpop.f32.mrb[4].mxu1 }
  0xfe   :  { %v200_v39 = vpop.f32.mrb[5].mxu0  ;;  %v232_v40 = vpop.f32.mrb[5].mxu1  ;;  %v209_v43 = vadd.f32 %v465_v37, %v331_v17  ;;  %v241_v44 = vadd.f32 %v473_v38, %v331_v17 }
  0xff   :  { %v466_v41 = vpop.f32.mrb[6].mxu0  ;;  %v474_v42 = vpop.f32.mrb[6].mxu1  ;;  %v201_v49 = vadd.f32 %v331_v17, %v200_v39  ;;  %v233_v50 = vadd.f32 %v331_v17, %v232_v40 }
 0x100   :  { %v212_v45 = vadd.f32 %v466_v41, %v331_v17  ;;  %v244_v46 = vadd.f32 %v474_v42, %v331_v17  ;;  %v203_v47 = vpop.f32.mrb[7].mxu0  ;;  %v235_v48 = vpop.f32.mrb[7].mxu1 }
 0x101   :  { %v204_v51 = vadd.f32 %v331_v17, %v203_v47  ;;  %v236_v52 = vadd.f32 %v331_v17, %v235_v48 }
 0x102   :  { %v398_v53 = vpack.c.bf16 %v212_v45, %v209_v43  ;;  %v418_v54 = vpack.c.bf16 %v244_v46, %v241_v44 }
 0x103   :  { %v393_v55 = vpack.c.bf16 %v204_v51, %v201_v49  ;;  %v413_v56 = vpack.c.bf16 %v236_v52, %v233_v50 }
 0x104   :  { %422 = vst [vmem:[%s605_s3 + $0x18] sm:$0xff] %v398_v53   ;;  %426 = vst [vmem:[%s605_s3 + $0x38] sm:$0xff] %v418_v54  }
 0x105   :  { %421 = vst [vmem:[%s605_s3 + $0x10] sm:$0xff] %v393_v55   ;;  %425 = vst [vmem:[%s605_s3 + $0x30] sm:$0xff] %v413_v56  }

// kernel: gnn_forward.4
= control target key start
LH: loop header
LB: loop body
LE: loop exit
PB: predicated region body
PF: predicated region fallthrough
CT: control target
= control target key end

     0   :  { %s922_s1 = inlined_call_operand.vmem [shape: bf16[128,128], index: 1, kind: input, shape index: {}]   ;;  %s923_s0 = inlined_call_operand.vmem [shape: f32[128,128], index: 0, kind: input, shape index: {}]   ;;  %s924_s2 = inlined_call_operand.vmem [shape: bf16[128,128], index: 2, kind: input, shape index: {}]   ;;  %s925_s3 = inlined_call_operand.vmem [shape: f32[1,128], index: 3, kind: input, shape index: {}]   ;;  %s926_s4 = inlined_call_operand.vmem [shape: bf16[128,128], index: 4, kind: output, shape index: {}]  }
   0x1   :  { %v758_v0 = vld [vmem:[%s922_s1] sm:$0xff]   ;;  %v759_v1 = vld [vmem:[%s922_s1 + $0x8] sm:$0xff]   ;;  %v760_v2 = vld [vmem:[%s922_s1 + $0x10] sm:$0xff]  }
   0x2   :  { %694 = vmatprep.subr.bf16.mxu0 %v758_v0  ;;  %v761_v3 = vld [vmem:[%s922_s1 + $0x18] sm:$0xff]   ;;  %v54_v4 = vld [vmem:[%s923_s0] sm:$0xff]  ;;  %v55_v5 = vld [vmem:[%s923_s0 + $0x8] sm:$0xff] }
   0x3   :  { %695 = vmatpush3.bf16.msra.mxu0 %v758_v0  ;;  %v70_v6 = vpack.c.bf16 %v55_v5, %v54_v4  ;;  %v762_v7 = vld [vmem:[%s922_s1 + $0x20] sm:$0xff]   ;;  %v767_v9 = vld [vmem:[%s924_s2 + $0x8] sm:$0xff]   ;;  %v768_v11 = vld [vmem:[%s924_s2 + $0x10] sm:$0xff]  }
   0x4   :  { %696 = vmatprep.subr.bf16.mxu0 %v759_v1  ;;  %v766_v8 = vld [vmem:[%s924_s2] sm:$0xff]   ;;  %v763_v10 = vld [vmem:[%s922_s1 + $0x28] sm:$0xff]   ;;  %v764_v12 = vld [vmem:[%s922_s1 + $0x30] sm:$0xff]  }
   0x5   :  { %710 = vmatprep.mubr.bf16.mxu0 %v70_v6  ;;  %726 = vmatprep.subr.bf16.mxu1 %v766_v8  ;;  %v769_v13 = vld [vmem:[%s924_s2 + $0x18] sm:$0xff]   ;;  %v770_v15 = vld [vmem:[%s924_s2 + $0x20] sm:$0xff]   ;;  %v56_v16 = vld [vmem:[%s923_s0 + $0x10] sm:$0xff] }
   0x6   :  { %727 = vmatpush3.bf16.msra.mxu1 %v766_v8  ;;  %v765_v14 = vld [vmem:[%s922_s1 + $0x38] sm:$0xff]   ;;  %v58_v18 = vld [vmem:[%s923_s0 + $0x20] sm:$0xff]  ;;  %v59_v19 = vld [vmem:[%s923_s0 + $0x28] sm:$0xff] }
   0x7   :  { %697 = vmatpush3.bf16.msra.mxu0 %v759_v1  ;;  %728 = vmatprep.subr.bf16.mxu1 %v767_v9  ;;  %v57_v17 = vld [vmem:[%s923_s0 + $0x18] sm:$0xff]  ;;  %v771_v21 = vld [vmem:[%s924_s2 + $0x28] sm:$0xff]   ;;  %v72_v22 = vpack.c.bf16 %v59_v19, %v58_v18  ;;  %v60_v23 = vld [vmem:[%s923_s0 + $0x30] sm:$0xff] }
   0x8   :  { %698 = vmatprep.subr.bf16.mxu0 %v760_v2  ;;  %v71_v20 = vpack.c.bf16 %v57_v17, %v56_v16  ;;  %v61_v24 = vld [vmem:[%s923_s0 + $0x38] sm:$0xff]  ;;  %v62_v25 = vld [vmem:[%s923_s0 + $0x40] sm:$0xff]  ;;  %v63_v26 = vld [vmem:[%s923_s0 + $0x48] sm:$0xff] }
   0x9   :  { %v73_v27 = vpack.c.bf16 %v61_v24, %v60_v23  ;;  %v74_v28 = vpack.c.bf16 %v63_v26, %v62_v25  ;;  %v64_v29 = vld [vmem:[%s923_s0 + $0x50] sm:$0xff]  ;;  %v65_v30 = vld [vmem:[%s923_s0 + $0x58] sm:$0xff]  ;;  %v66_v31 = vld [vmem:[%s923_s0 + $0x60] sm:$0xff] }
   0xa   :  { %729 = vmatpush3.bf16.msra.mxu1 %v767_v9  ;;  %v67_v32 = vld [vmem:[%s923_s0 + $0x68] sm:$0xff]  ;;  %v75_v33 = vpack.c.bf16 %v65_v30, %v64_v29  ;;  %v68_v35 = vld [vmem:[%s923_s0 + $0x70] sm:$0xff]  ;;  %v69_v36 = vld [vmem:[%s923_s0 + $0x78] sm:$0xff] }
   0xb   :  { %699 = vmatpush3.bf16.msra.mxu0 %v760_v2  ;;  %730 = vmatprep.subr.bf16.mxu1 %v768_v11  ;;  %v76_v34 = vpack.c.bf16 %v67_v32, %v66_v31  ;;  %v77_v37 = vpack.c.bf16 %v69_v36, %v68_v35  ;;  %v772_v38 = vld [vmem:[%s924_s2 + $0x30] sm:$0xff]   ;;  %v773_v39 = vld [vmem:[%s924_s2 + $0x38] sm:$0xff]   ;;  %v574_v17 = vld [vmem:[%s925_s3] ss:$0 sm:$0xff] }
   0xc   :  { %700 = vmatprep.subr.bf16.mxu0 %v761_v3 }
   0xe   :  { %731 = vmatpush3.bf16.msra.mxu1 %v768_v11 }
   0xf   :  { %701 = vmatpush3.bf16.msra.mxu0 %v761_v3  ;;  %732 = vmatprep.subr.bf16.mxu1 %v769_v13 }
  0x10   :  { %702 = vmatprep.subr.bf16.mxu0 %v762_v7 }
  0x12   :  { %733 = vmatpush3.bf16.msra.mxu1 %v769_v13 }
  0x13   :  { %703 = vmatpush3.bf16.msra.mxu0 %v762_v7  ;;  %734 = vmatprep.subr.bf16.mxu1 %v770_v15 }
  0x14   :  { %704 = vmatprep.subr.bf16.mxu0 %v763_v10 }
  0x16   :  { %735 = vmatpush3.bf16.msra.mxu1 %v770_v15 }
  0x17   :  { %705 = vmatpush3.bf16.msra.mxu0 %v763_v10  ;;  %736 = vmatprep.subr.bf16.mxu1 %v771_v21 }
  0x18   :  { %706 = vmatprep.subr.bf16.mxu0 %v764_v12 }
  0x1a   :  { %737 = vmatpush3.bf16.msra.mxu1 %v771_v21 }
  0x1b   :  { %707 = vmatpush3.bf16.msra.mxu0 %v764_v12  ;;  %738 = vmatprep.subr.bf16.mxu1 %v772_v38 }
  0x1c   :  { %708 = vmatprep.subr.bf16.mxu0 %v765_v14 }
  0x1e   :  { %739 = vmatpush3.bf16.msra.mxu1 %v772_v38 }
  0x1f   :  { %709 = vmatpush3.bf16.msra.mxu0 %v765_v14  ;;  %740 = vmatprep.subr.bf16.mxu1 %v773_v39 }
  0x22   :  { %711 = vmatmul.mubr.bf16.vlgmr.msra.gmra.mrb[0].mxu0 %v71_v20  ;;  %741 = vmatpush3.bf16.msra.mxu1 %v773_v39 }
  0x23   :  { %714 = vmatprep.mubr.bf16.mxu0 %v72_v22 }
  0x2a   :  { %715 = vmatmul.mubr.bf16.gmra.mrb[4].mxu0 %v73_v27 }
  0x2b   :  { %718 = vmatprep.mubr.bf16.mxu0 %v74_v28 }
  0x32   :  { %719 = vmatmul.mubr.bf16.gmra.mrb[8].mxu0 %v75_v33 }
  0x33   :  { %722 = vmatprep.mubr.bf16.mxu0 %v76_v34 }
  0x3a   :  { %723 = vmatmul.mubr.bf16.gmra.mrb[12].mxu0 %v77_v37 }
  0xf5   :  { %v712_v40 = vpop.f32.mrb[0].mxu0 }
  0xf6   :  { %v176_v41 = vpop.f32.mrb[1].mxu0  ;;  %v292_v43 = vmax.f32 %v712_v40, 0.0 }
  0xf7   :  { %v713_v42 = vpop.f32.mrb[2].mxu0  ;;  %v290_v46 = vmax.f32 %v176_v41, 0.0 }
  0xf8   :  { %v293_v44 = vmax.f32 %v713_v42, 0.0  ;;  %v179_v45 = vpop.f32.mrb[3].mxu0 }
  0xf9   :  { %v291_v47 = vmax.f32 %v179_v45, 0.0 }
  0xfa   :  { %v307_v48 = vpack.c.bf16 %v293_v44, %v292_v43 }
  0xfb   :  { %v306_v49 = vpack.c.bf16 %v291_v47, %v290_v46 }
  0xfd   :  { %v716_v50 = vpop.f32.mrb[4].mxu0  ;;  %742 = vmatprep.mubr.bf16.mxu1 %v306_v49 }
  0xfe   :  { %v192_v51 = vpop.f32.mrb[5].mxu0  ;;  %743 = vmatmul.mubr.bf16.vlgmr.msra.gmra.mrb[0].mxu1 %v307_v48  ;;  %v296_v53 = vmax.f32 %v716_v50, 0.0 }
  0xff   :  { %v717_v52 = vpop.f32.mrb[6].mxu0  ;;  %v294_v56 = vmax.f32 %v192_v51, 0.0 }
 0x100   :  { %v297_v54 = vmax.f32 %v717_v52, 0.0  ;;  %v195_v55 = vpop.f32.mrb[7].mxu0 }
 0x101   :  { %v295_v57 = vmax.f32 %v195_v55, 0.0 }
 0x102   :  { %v309_v58 = vpack.c.bf16 %v297_v54, %v296_v53 }
 0x103   :  { %v308_v59 = vpack.c.bf16 %v295_v57, %v294_v56 }
 0x105   :  { %v720_v60 = vpop.f32.mrb[8].mxu0  ;;  %746 = vmatprep.mubr.bf16.mxu1 %v308_v59 }
 0x106   :  { %v208_v61 = vpop.f32.mrb[9].mxu0  ;;  %747 = vmatmul.mubr.bf16.gmra.mrb[4].mxu1 %v309_v58  ;;  %v300_v63 = vmax.f32 %v720_v60, 0.0 }
 0x107   :  { %v721_v62 = vpop.f32.mrb[10].mxu0  ;;  %v298_v2 = vmax.f32 %v208_v61, 0.0 }
 0x108   :  { %v301_v0 = vmax.f32 %v721_v62, 0.0  ;;  %v211_v1 = vpop.f32.mrb[11].mxu0 }
 0x109   :  { %v299_v3 = vmax.f32 %v211_v1, 0.0 }
 0x10a   :  { %v311_v4 = vpack.c.bf16 %v301_v0, %v300_v63 }
 0x10b   :  { %v310_v5 = vpack.c.bf16 %v299_v3, %v298_v2 }
 0x10d   :  { %v724_v6 = vpop.f32.mrb[12].mxu0  ;;  %750 = vmatprep.mubr.bf16.mxu1 %v310_v5 }
 0x10e   :  { %v224_v7 = vpop.f32.mrb[13].mxu0  ;;  %751 = vmatmul.mubr.bf16.gmra.mrb[8].mxu1 %v311_v4  ;;  %v304_v9 = vmax.f32 %v724_v6, 0.0 }
 0x10f   :  { %v725_v8 = vpop.f32.mrb[14].mxu0  ;;  %v302_v12 = vmax.f32 %v224_v7, 0.0 }
 0x110   :  { %v305_v10 = vmax.f32 %v725_v8, 0.0  ;;  %v227_v11 = vpop.f32.mrb[15].mxu0 }
 0x111   :  { %v303_v13 = vmax.f32 %v227_v11, 0.0 }
 0x112   :  { %v313_v14 = vpack.c.bf16 %v305_v10, %v304_v9 }
 0x113   :  { %v312_v15 = vpack.c.bf16 %v303_v13, %v302_v12 }
 0x115   :  { %754 = vmatprep.mubr.bf16.mxu1 %v312_v15 }
 0x116   :  { %755 = vmatmul.mubr.bf16.gmra.mrb[12].mxu1 %v313_v14 }
 0x1d1   :  { %v744_v16 = vpop.f32.mrb[0].mxu1 }
 0x1d2   :  { %v419_v18 = vpop.f32.mrb[1].mxu1  ;;  %v428_v20 = vadd.f32 %v744_v16, %v574_v17 }
 0x1d3   :  { %v745_v19 = vpop.f32.mrb[2].mxu1  ;;  %v420_v23 = vadd.f32 %v574_v17, %v419_v18 }
 0x1d4   :  { %v431_v21 = vadd.f32 %v745_v19, %v574_v17  ;;  %v422_v22 = vpop.f32.mrb[3].mxu1 }
 0x1d5   :  { %v423_v24 = vadd.f32 %v574_v17, %v422_v22 }
 0x1d6   :  { %v623_v25 = vpack.c.bf16 %v431_v21, %v428_v20 }
 0x1d7   :  { %v618_v26 = vpack.c.bf16 %v423_v24, %v420_v23 }
 0x1d8   :  { %655 = vst [vmem:[%s926_s4 + $0x8] sm:$0xff] %v623_v25  }
 0x1d9   :  { %619 = vst [vmem:[%s926_s4] sm:$0xff] %v618_v26   ;;  %v748_v27 = vpop.f32.mrb[4].mxu1 }
 0x1da   :  { %v435_v28 = vpop.f32.mrb[5].mxu1  ;;  %v444_v30 = vadd.f32 %v748_v27, %v574_v17 }
 0x1db   :  { %v749_v29 = vpop.f32.mrb[6].mxu1  ;;  %v436_v33 = vadd.f32 %v574_v17, %v435_v28 }
 0x1dc   :  { %v447_v31 = vadd.f32 %v749_v29, %v574_v17  ;;  %v438_v32 = vpop.f32.mrb[7].mxu1 }
 0x1dd   :  { %v439_v34 = vadd.f32 %v574_v17, %v438_v32 }
 0x1de   :  { %v633_v35 = vpack.c.bf16 %v447_v31, %v444_v30 }
 0x1df   :  { %v628_v36 = vpack.c.bf16 %v439_v34, %v436_v33 }
 0x1e0   :  { %657 = vst [vmem:[%s926_s4 + $0x18] sm:$0xff] %v633_v35  }
 0x1e1   :  { %656 = vst [vmem:[%s926_s4 + $0x10] sm:$0xff] %v628_v36   ;;  %v752_v37 = vpop.f32.mrb[8].mxu1 }
 0x1e2   :  { %v451_v38 = vpop.f32.mrb[9].mxu1  ;;  %v460_v40 = vadd.f32 %v752_v37, %v574_v17 }
 0x1e3   :  { %v753_v39 = vpop.f32.mrb[10].mxu1  ;;  %v452_v43 = vadd.f32 %v574_v17, %v451_v38 }
 0x1e4   :  { %v463_v41 = vadd.f32 %v753_v39, %v574_v17  ;;  %v454_v42 = vpop.f32.mrb[11].mxu1 }
 0x1e5   :  { %v455_v44 = vadd.f32 %v574_v17, %v454_v42 }
 0x1e6   :  { %v643_v45 = vpack.c.bf16 %v463_v41, %v460_v40 }
 0x1e7   :  { %v638_v46 = vpack.c.bf16 %v455_v44, %v452_v43 }
 0x1e8   :  { %659 = vst [vmem:[%s926_s4 + $0x28] sm:$0xff] %v643_v45  }
 0x1e9   :  { %658 = vst [vmem:[%s926_s4 + $0x20] sm:$0xff] %v638_v46   ;;  %v756_v47 = vpop.f32.mrb[12].mxu1 }
 0x1ea   :  { %v467_v48 = vpop.f32.mrb[13].mxu1  ;;  %v476_v50 = vadd.f32 %v756_v47, %v574_v17 }
 0x1eb   :  { %v757_v49 = vpop.f32.mrb[14].mxu1  ;;  %v468_v53 = vadd.f32 %v574_v17, %v467_v48 }
 0x1ec   :  { %v479_v51 = vadd.f32 %v757_v49, %v574_v17  ;;  %v470_v52 = vpop.f32.mrb[15].mxu1 }
 0x1ed   :  { %v471_v54 = vadd.f32 %v574_v17, %v470_v52 }
 0x1ee   :  { %v653_v55 = vpack.c.bf16 %v479_v51, %v476_v50 }
 0x1ef   :  { %v648_v56 = vpack.c.bf16 %v471_v54, %v468_v53 }
 0x1f0   :  { %661 = vst [vmem:[%s926_s4 + $0x38] sm:$0xff] %v653_v55  }
 0x1f1   :  { %660 = vst [vmem:[%s926_s4 + $0x30] sm:$0xff] %v648_v56  }

</bundles_post_ra>
